<compile_context>
chip_gen: v6e
topology: v6e:2x2x1
jax: 0.10.0
libtpu: 0.0.40
codegen_flags: <defaults>
</compile_context>

<pallas_src>
import numpy as np

import jax
import jax.numpy as jnp
from jax import lax
from jax.experimental import pallas as pl
from jax.experimental.pallas import tpu as pltpu


# ----------------------------------------------------------------------------
# Host-side operator construction (plain numpy glue)
# ----------------------------------------------------------------------------
def _bilinear_upsample_matrix(n_in: int, scale: int = 2) -> np.ndarray:
    """Interpolation matrix matching nn.Upsample(scale_factor=2, mode='bilinear',
    align_corners=False): out = M @ in along one spatial axis."""
    n_out = n_in * scale
    m = np.zeros((n_out, n_in), np.float32)
    for o in range(n_out):
        c = (o + 0.5) / scale - 0.5
        c = max(c, 0.0)                       # torch clamps negative source coords
        i0 = int(np.floor(c))
        frac = c - i0
        i1 = min(i0 + 1, n_in - 1)
        i0 = min(i0, n_in - 1)
        m[o, i0] += 1.0 - frac
        m[o, i1] += frac
    return m


def _band_window(W: int, TW: int):
    """Input-column support (band) of each TW-wide output-column tile."""
    W2 = 2 * W
    NWT = W2 // TW
    UW = _bilinear_upsample_matrix(W)                    # (W2, W)
    UWp = np.zeros((W2 + 2, W), np.float32)              # conv pad=1 -> zero rows
    UWp[1:W2 + 1] = UW
    lo, hi = [], []
    for t in range(NWT):
        q0 = t * TW
        nz = np.where(np.any(UWp[q0:q0 + TW + 2, :] != 0.0, axis=0))[0]
        lo.append(int(nz.min()))
        hi.append(int(nz.max()))
    IW = min(max(h - l + 1 for l, h in zip(lo, hi)), W)
    i0 = np.array([max(0, min(l, W - IW)) for l in lo], np.int32)
    return i0, IW


def _build_banded_w_operator(w_hwio, W, Cin, Cout, TW, i0, IW):
    """Composed (W-upsample + conv zero-pad + conv column dx) banded operator.

    Returns mp of shape (NWT*3, IW*Cin, TW*Cout) with
      mp[t*3+dy][(i - i0[t])*Cin + c, q_rel*Cout + o]
          = sum_dx UWp[t*TW + q_rel + dx, i] * w[dy, dx, c, o]
    """
    W2 = 2 * W
    NWT = W2 // TW
    UW = _bilinear_upsample_matrix(W)
    UWp = np.zeros((W2 + 2, W), np.float32)
    UWp[1:W2 + 1] = UW
    w_np = np.asarray(w_hwio, np.float32)                # (3, 3, Cin, Cout)

    Kb, TN = IW * Cin, TW * Cout
    mp = np.zeros((NWT, 3, Kb, TN), np.float32)
    for t in range(NWT):
        q0, s = t * TW, int(i0[t])
        for dy in range(3):
            for dx in range(3):
                mp[t, dy] += np.kron(UWp[q0 + dx:q0 + dx + TW, s:s + IW].T,
                                     w_np[dy, dx])
    return mp.reshape(NWT * 3, Kb, TN)


# ----------------------------------------------------------------------------
# VMEM-budget-driven tile selection
# ----------------------------------------------------------------------------
def _vmem_capacity_bytes() -> int:
    try:
        cap = int(pltpu.get_tpu_info().vmem_capacity_bytes)
        if cap > 0:
            return cap
    except Exception:
        pass
    return 64 * 2 ** 20            # conservative (v7x per-TensorCore) fallback


def _step_vmem_bytes(rows, Kb, TN):
    """Double-buffered per-grid-step working set (bytes)."""
    x_b = rows * Kb * 2                       # bf16 activation window
    m_b = 3 * Kb * TN * 2                     # bf16 banded operator (3 conv rows)
    o_b = 2 * rows * TN * 4                   # f32 even/odd output blocks
    sc_b = 2 * TN * 4                         # scale / shift
    return 2 * (x_b + m_b + o_b + sc_b)


def _choose_tiles(B, H, W, Cin, Cout):
    """Pick (TW, bt) for the actual device.

    TW: smallest lane-dense output-width tile (TW*Cout % 128 == 0, >= 256 cols when
        possible) -> maximises band sparsity while keeping the MXU N dimension wide.
    bt: LARGEST divisor of B whose double-buffered working set fits ~half of VMEM.
    """
    W2 = 2 * W
    budget = _vmem_capacity_bytes() // 2

    cands = [d for d in range(2, W2 + 1, 2) if W2 % d == 0]
    lane_ok = [d for d in cands if (d * Cout) % 128 == 0]
    good = [d for d in lane_ok if d * Cout >= 256] or lane_ok
    TW = min(good) if good else W2            # fallback: full width (always legal)

    _, IW = _band_window(W, TW)
    Kb, TN = IW * Cin, TW * Cout

    bt = None
    for d in sorted((d for d in range(1, B + 1) if B % d == 0), reverse=True):
        rows = d * H
        if (rows % 8 != 0) and d != B:        # keep blocks sublane-aligned
            continue
        if _step_vmem_bytes(rows, Kb, TN) <= budget:
            bt = d
            break
    if bt is None:
        raise ValueError("no batch tile fits the VMEM budget; reduce TW")
    return TW, bt


# ----------------------------------------------------------------------------
# Wrapper + Pallas kernel
# ----------------------------------------------------------------------------
def up_conv_pallas(x_nchw, w_hwio, bias, gamma, beta, running_mean, running_var,
                   eps=1e-5):
    B, Cin, H, W = map(int, x_nchw.shape)
    KH, KW, _, Cout = map(int, w_hwio.shape)
    assert (KH, KW) == (3, 3) and H >= 2 and W >= 2
    H2, W2 = 2 * H, 2 * W
    N = W2 * Cout

    TW, bt = _choose_tiles(B, H, W, Cin, Cout)
    i0, IW = _band_window(W, TW)
    NWT, GB = W2 // TW, B // bt
    Kb, TN = IW * Cin, TW * Cout
    rows = bt * H

    # ---- operands -----------------------------------------------------------
    # x windows: (NWT, B*H, IW*Cin) bf16 -- per-column-tile input bands, with batch
    # and height folded into the matmul row (M) dimension.
    x_nhwc = jnp.transpose(x_nchw, (0, 2, 3, 1)).astype(jnp.bfloat16)
    x_win = jnp.stack(
        [x_nhwc[:, :, int(st):int(st) + IW, :].reshape(B * H, Kb) for st in i0],
        axis=0)

    mp = jnp.asarray(_build_banded_w_operator(w_hwio, W, Cin, Cout, TW, i0, IW),
                     jnp.bfloat16)                               # (NWT*3, Kb, TN)

    # conv bias + BatchNorm (running stats) fused into per-channel scale/shift
    sc_vec = gamma / jnp.sqrt(running_var + eps)
    sh_vec = (bias - running_mean) * sc_vec + beta
    scale_t = jnp.tile(sc_vec.astype(jnp.float32), (TW,))[None, :]   # (1, TN)
    shift_t = jnp.tile(sh_vec.astype(jnp.float32), (TW,))[None, :]

    # explicit VMEM limit from the measured capacity (double-buffered blocks + margin)
    cap = _vmem_capacity_bytes()
    need = _step_vmem_bytes(rows, Kb, TN)
    vmem_limit = int(min(0.9 * cap, max(need + (4 << 20), 16 << 20)))

    def kernel(x_ref, m_ref, sc_ref, sh_ref, oe_ref, oo_ref):
        # x_ref:  (1, rows, Kb)  bf16   input band rows for this (tile, batch) block
        # m_ref:  (3, Kb, TN)    bf16   composed W-upsample+pad+conv, per conv row dy
        # sc/sh:  (1, TN)        f32    fused conv-bias + BatchNorm scale / shift
        # oe/oo:  (rows, TN)     f32    even / odd output rows
        x = x_ref[0]
        # conv-in-W (bf16 MXU, f32 accumulation): one matmul per conv row dy
        z = [jnp.dot(x, m_ref[dy], preferred_element_type=jnp.float32)
                 .reshape(bt, H, TN) for dy in range(3)]

        # H-direction bilinear 2x upsample + conv-row combine on the VPU:
        # every output row mixes <= 2 z rows with weights {0.25, 0.75}.
        def prev_clamp(a):    # a[:, i] -> a[:, max(i - 1, 0)]
            return jnp.concatenate([a[:, :1], a[:, :-1]], axis=1)

        def next_clamp(a):    # a[:, i] -> a[:, min(i + 1, H - 1)]
            return jnp.concatenate([a[:, 1:], a[:, -1:]], axis=1)

        up_e = lambda a: 0.75 * a + 0.25 * prev_clamp(a)   # upsampled even rows
        up_o = lambda a: 0.75 * a + 0.25 * next_clamp(a)   # upsampled odd rows

        zero = jnp.zeros((bt, 1, TN), jnp.float32)
        u0o, u2e = up_o(z[0]), up_e(z[2])
        y_even = (jnp.concatenate([zero, u0o[:, :-1]], axis=1)    # dy=0 @ row p-1
                  + up_e(z[1]) + up_o(z[2]))
        y_odd = (up_e(z[0]) + up_o(z[1])
                 + jnp.concatenate([u2e[:, 1:], zero], axis=1))   # dy=2 @ row p+1

        sc, sh = sc_ref[...], sh_ref[...]
        oe_ref[...] = jnp.maximum(y_even.reshape(rows, TN) * sc + sh, 0.0)
        oo_ref[...] = jnp.maximum(y_odd.reshape(rows, TN) * sc + sh, 0.0)

    out_even, out_odd = pl.pallas_call(
        kernel,
        out_shape=(jax.ShapeDtypeStruct((B * H, N), jnp.float32),
                   jax.ShapeDtypeStruct((B * H, N), jnp.float32)),
        # column-tile axis OUTER -> banded operator stays resident across batch steps
        grid=(NWT, GB),
        in_specs=[
            pl.BlockSpec((1, rows, Kb), lambda n, b: (n, b, 0)),
            pl.BlockSpec((3, Kb, TN), lambda n, b: (n, 0, 0)),
            pl.BlockSpec((1, TN), lambda n, b: (0, 0)),
            pl.BlockSpec((1, TN), lambda n, b: (0, 0)),
        ],
        out_specs=(pl.BlockSpec((rows, TN), lambda n, b: (b, n)),
                   pl.BlockSpec((rows, TN), lambda n, b: (b, n))),
        compiler_params=pltpu.CompilerParams(
            dimension_semantics=("parallel", "parallel"),
            vmem_limit_bytes=vmem_limit),
    )(x_win, mp, scale_t, shift_t)

    # interleave even/odd output rows and return NCHW (the stack/reshape fuses into
    # the final transpose in XLA).
    out = jnp.stack([out_even, out_odd], axis=1)              # (B*H, 2, N)
    out = out.reshape(B, H2, W2, Cout)
    return jnp.transpose(out, (0, 3, 1, 2))


# ----------------------------------------------------------------------------
# Pure-JAX reference (sanity check only)
# ----------------------------------------------------------------------------
def up_conv_reference(x_nchw, w_hwio, bias, gamma, beta, running_mean,
                      running_var, eps=1e-5):
    B, Cin, H, W = x_nchw.shape
    x_nhwc = jnp.transpose(x_nchw, (0, 2, 3, 1))
    UH = jnp.asarray(_bilinear_upsample_matrix(H))
    UW = jnp.asarray(_bilinear_upsample_matrix(W))
    up = jnp.einsum('ph,qw,bhwc->bpqc', UH, UW, x_nhwc,
                    precision=lax.Precision.HIGHEST)
    y = lax.conv_general_dilated(up, w_hwio, (1, 1), 'SAME',
                                 dimension_numbers=('NHWC', 'HWIO', 'NHWC'),
                                 precision=lax.Precision.HIGHEST)
    y = y + bias
    y = (y - running_mean) * gamma / jnp.sqrt(running_var + eps) + beta
    y = jnp.maximum(y, 0.0)
    return jnp.transpose(y, (0, 3, 1, 2))


if __name__ == "__main__":
    # up_conv(ch_in=4, ch_out=16), input NCHW (2, 4, 8, 16) -> output (2, 16, 16, 32);
    # exercises 2 banded column tiles (TW=16, IW=9) and the lane-dense TN=256 path.
    B, Cin, Cout, H, W = 2, 4, 16, 8, 16

    key = jax.random.PRNGKey(0)
    kx, kw, kb, kg, kbe, km, kv = jax.random.split(key, 7)
    x = jax.random.normal(kx, (B, Cin, H, W), jnp.float32)
    w_hwio = 0.1 * jax.random.normal(kw, (3, 3, Cin, Cout), jnp.float32)
    bias = 0.1 * jax.random.normal(kb, (Cout,), jnp.float32)
    gamma = 1.0 + 0.1 * jax.random.normal(kg, (Cout,), jnp.float32)
    beta = 0.1 * jax.random.normal(kbe, (Cout,), jnp.float32)
    running_mean = 0.1 * jax.random.normal(km, (Cout,), jnp.float32)
    running_var = jax.random.uniform(kv, (Cout,), jnp.float32, 0.5, 1.5)

    out = jax.block_until_ready(
        up_conv_pallas(x, w_hwio, bias, gamma, beta, running_mean, running_var))
    ref = jax.block_until_ready(
        up_conv_reference(x, w_hwio, bias, gamma, beta, running_mean, running_var))

    assert out.shape == (B, Cout, 2 * H, 2 * W), out.shape
    # bf16 activations / structural weights give ~1e-2 abs error at O(1) magnitudes;
    # accumulation is float32.
    err = float(jnp.max(jnp.abs(out - ref)))
    assert err < 5e-2, f"max abs error too large: {err}"
    print("KERNEL_OK")
</pallas_src>

<mosaic_0001>
module attributes {stable_mosaic.version = 11 : i64} {
  func.func @kernel(%arg0: i32, %arg1: i32, %arg2: memref<1x16x36xbf16, #tpu.memory_space<vmem>>, %arg3: memref<3x36x256xbf16, #tpu.memory_space<vmem>>, %arg4: memref<1x256xf32, #tpu.memory_space<vmem>>, %arg5: memref<1x256xf32, #tpu.memory_space<vmem>>, %arg6: memref<16x256xf32, #tpu.memory_space<vmem>>, %arg7: memref<16x256xf32, #tpu.memory_space<vmem>>) attributes {dimension_semantics = [#tpu.dimension_semantics<parallel>, #tpu.dimension_semantics<parallel>], iteration_bounds = array<i64: 2, 1>, scalar_prefetch = 0 : i64, scratch_operands = 0 : i64, tpu.core_type = #tpu.core_type<tc>, window_params = [{transform_indices = @transform_0, window_bounds = array<i64: 1, 16, 36>}, {transform_indices = @transform_1, window_bounds = array<i64: 3, 36, 256>}, {pipeline_mode = #tpu.pipeline_mode<synchronous>, transform_indices = @transform_2, window_bounds = array<i64: 1, 256>}, {pipeline_mode = #tpu.pipeline_mode<synchronous>, transform_indices = @transform_3, window_bounds = array<i64: 1, 256>}, {transform_indices = @transform_4, window_bounds = array<i64: 16, 256>}, {transform_indices = @transform_5, window_bounds = array<i64: 16, 256>}]} {
    %c0 = arith.constant 0 : index
    %c0_0 = arith.constant 0 : index
    %c0_1 = arith.constant 0 : index
    %0 = vector.load %arg2[%c0, %c0_0, %c0_1] : memref<1x16x36xbf16, #tpu.memory_space<vmem>>, vector<1x16x36xbf16>
    %1 = vector.shape_cast %0 : vector<1x16x36xbf16> to vector<16x36xbf16>
    %c0_2 = arith.constant 0 : index
    %c0_3 = arith.constant 0 : index
    %c0_4 = arith.constant 0 : index
    %2 = vector.load %arg3[%c0_2, %c0_3, %c0_4] : memref<3x36x256xbf16, #tpu.memory_space<vmem>>, vector<1x36x256xbf16>
    %3 = vector.shape_cast %2 : vector<1x36x256xbf16> to vector<36x256xbf16>
    %cst = arith.constant dense<0.000000e+00> : vector<16x256xf32>
    %4 = tpu.matmul %1, %3, %cst {dimension_numbers = #tpu.dot_dimension_numbers<[1], [0], [0], [1], [0, 0, 1, 1], [], []>} : vector<16x36xbf16>, vector<36x256xbf16>, vector<16x256xf32> -> vector<16x256xf32>
    %5 = vector.shape_cast %4 : vector<16x256xf32> to vector<2x8x256xf32>
    %c1 = arith.constant 1 : index
    %c0_5 = arith.constant 0 : index
    %c0_6 = arith.constant 0 : index
    %6 = vector.load %arg3[%c1, %c0_5, %c0_6] : memref<3x36x256xbf16, #tpu.memory_space<vmem>>, vector<1x36x256xbf16>
    %7 = vector.shape_cast %6 : vector<1x36x256xbf16> to vector<36x256xbf16>
    %cst_7 = arith.constant dense<0.000000e+00> : vector<16x256xf32>
    %8 = tpu.matmul %1, %7, %cst_7 {dimension_numbers = #tpu.dot_dimension_numbers<[1], [0], [0], [1], [0, 0, 1, 1], [], []>} : vector<16x36xbf16>, vector<36x256xbf16>, vector<16x256xf32> -> vector<16x256xf32>
    %9 = vector.shape_cast %8 : vector<16x256xf32> to vector<2x8x256xf32>
    %c2 = arith.constant 2 : index
    %c0_8 = arith.constant 0 : index
    %c0_9 = arith.constant 0 : index
    %10 = vector.load %arg3[%c2, %c0_8, %c0_9] : memref<3x36x256xbf16, #tpu.memory_space<vmem>>, vector<1x36x256xbf16>
    %11 = vector.shape_cast %10 : vector<1x36x256xbf16> to vector<36x256xbf16>
    %cst_10 = arith.constant dense<0.000000e+00> : vector<16x256xf32>
    %12 = tpu.matmul %1, %11, %cst_10 {dimension_numbers = #tpu.dot_dimension_numbers<[1], [0], [0], [1], [0, 0, 1, 1], [], []>} : vector<16x36xbf16>, vector<36x256xbf16>, vector<16x256xf32> -> vector<16x256xf32>
    %13 = vector.shape_cast %12 : vector<16x256xf32> to vector<2x8x256xf32>
    %cst_11 = arith.constant 0.000000e+00 : f32
    %14 = vector.broadcast %cst_11 : f32 to vector<2x1x256xf32>
    %cst_12 = arith.constant 7.500000e-01 : f32
    %15 = vector.broadcast %cst_12 : f32 to vector<2x8x256xf32>
    %16 = arith.mulf %15, %5 : vector<2x8x256xf32>
    %17 = vector.extract_strided_slice %5 {offsets = [0, 1, 0], sizes = [2, 7, 256], strides = [1, 1, 1]} : vector<2x8x256xf32> to vector<2x7x256xf32>
    %18 = vector.extract_strided_slice %5 {offsets = [0, 7, 0], sizes = [2, 1, 256], strides = [1, 1, 1]} : vector<2x8x256xf32> to vector<2x1x256xf32>
    %19 = tpu.concatenate %17, %18 in 1 : vector<2x7x256xf32>, vector<2x1x256xf32> -> vector<2x8x256xf32>
    %cst_13 = arith.constant 2.500000e-01 : f32
    %20 = vector.broadcast %cst_13 : f32 to vector<2x8x256xf32>
    %21 = arith.mulf %20, %19 : vector<2x8x256xf32>
    %22 = arith.addf %16, %21 : vector<2x8x256xf32>
    %cst_14 = arith.constant 7.500000e-01 : f32
    %23 = vector.broadcast %cst_14 : f32 to vector<2x8x256xf32>
    %24 = arith.mulf %23, %13 : vector<2x8x256xf32>
    %25 = vector.extract_strided_slice %13 {offsets = [0, 0, 0], sizes = [2, 1, 256], strides = [1, 1, 1]} : vector<2x8x256xf32> to vector<2x1x256xf32>
    %26 = vector.extract_strided_slice %13 {offsets = [0, 0, 0], sizes = [2, 7, 256], strides = [1, 1, 1]} : vector<2x8x256xf32> to vector<2x7x256xf32>
    %27 = tpu.concatenate %25, %26 in 1 : vector<2x1x256xf32>, vector<2x7x256xf32> -> vector<2x8x256xf32>
    %cst_15 = arith.constant 2.500000e-01 : f32
    %28 = vector.broadcast %cst_15 : f32 to vector<2x8x256xf32>
    %29 = arith.mulf %28, %27 : vector<2x8x256xf32>
    %30 = arith.addf %24, %29 : vector<2x8x256xf32>
    %31 = vector.extract_strided_slice %22 {offsets = [0, 0, 0], sizes = [2, 7, 256], strides = [1, 1, 1]} : vector<2x8x256xf32> to vector<2x7x256xf32>
    %32 = tpu.concatenate %14, %31 in 1 : vector<2x1x256xf32>, vector<2x7x256xf32> -> vector<2x8x256xf32>
    %cst_16 = arith.constant 7.500000e-01 : f32
    %33 = vector.broadcast %cst_16 : f32 to vector<2x8x256xf32>
    %34 = arith.mulf %33, %9 : vector<2x8x256xf32>
    %35 = vector.extract_strided_slice %9 {offsets = [0, 0, 0], sizes = [2, 1, 256], strides = [1, 1, 1]} : vector<2x8x256xf32> to vector<2x1x256xf32>
    %36 = vector.extract_strided_slice %9 {offsets = [0, 0, 0], sizes = [2, 7, 256], strides = [1, 1, 1]} : vector<2x8x256xf32> to vector<2x7x256xf32>
    %37 = tpu.concatenate %35, %36 in 1 : vector<2x1x256xf32>, vector<2x7x256xf32> -> vector<2x8x256xf32>
    %cst_17 = arith.constant 2.500000e-01 : f32
    %38 = vector.broadcast %cst_17 : f32 to vector<2x8x256xf32>
    %39 = arith.mulf %38, %37 : vector<2x8x256xf32>
    %40 = arith.addf %34, %39 : vector<2x8x256xf32>
    %41 = arith.addf %32, %40 : vector<2x8x256xf32>
    %cst_18 = arith.constant 7.500000e-01 : f32
    %42 = vector.broadcast %cst_18 : f32 to vector<2x8x256xf32>
    %43 = arith.mulf %42, %13 : vector<2x8x256xf32>
    %44 = vector.extract_strided_slice %13 {offsets = [0, 1, 0], sizes = [2, 7, 256], strides = [1, 1, 1]} : vector<2x8x256xf32> to vector<2x7x256xf32>
    %45 = vector.extract_strided_slice %13 {offsets = [0, 7, 0], sizes = [2, 1, 256], strides = [1, 1, 1]} : vector<2x8x256xf32> to vector<2x1x256xf32>
    %46 = tpu.concatenate %44, %45 in 1 : vector<2x7x256xf32>, vector<2x1x256xf32> -> vector<2x8x256xf32>
    %cst_19 = arith.constant 2.500000e-01 : f32
    %47 = vector.broadcast %cst_19 : f32 to vector<2x8x256xf32>
    %48 = arith.mulf %47, %46 : vector<2x8x256xf32>
    %49 = arith.addf %43, %48 : vector<2x8x256xf32>
    %50 = arith.addf %41, %49 : vector<2x8x256xf32>
    %cst_20 = arith.constant 7.500000e-01 : f32
    %51 = vector.broadcast %cst_20 : f32 to vector<2x8x256xf32>
    %52 = arith.mulf %51, %5 : vector<2x8x256xf32>
    %53 = vector.extract_strided_slice %5 {offsets = [0, 0, 0], sizes = [2, 1, 256], strides = [1, 1, 1]} : vector<2x8x256xf32> to vector<2x1x256xf32>
    %54 = vector.extract_strided_slice %5 {offsets = [0, 0, 0], sizes = [2, 7, 256], strides = [1, 1, 1]} : vector<2x8x256xf32> to vector<2x7x256xf32>
    %55 = tpu.concatenate %53, %54 in 1 : vector<2x1x256xf32>, vector<2x7x256xf32> -> vector<2x8x256xf32>
    %cst_21 = arith.constant 2.500000e-01 : f32
    %56 = vector.broadcast %cst_21 : f32 to vector<2x8x256xf32>
    %57 = arith.mulf %56, %55 : vector<2x8x256xf32>
    %58 = arith.addf %52, %57 : vector<2x8x256xf32>
    %cst_22 = arith.constant 7.500000e-01 : f32
    %59 = vector.broadcast %cst_22 : f32 to vector<2x8x256xf32>
    %60 = arith.mulf %59, %9 : vector<2x8x256xf32>
    %61 = vector.extract_strided_slice %9 {offsets = [0, 1, 0], sizes = [2, 7, 256], strides = [1, 1, 1]} : vector<2x8x256xf32> to vector<2x7x256xf32>
    %62 = vector.extract_strided_slice %9 {offsets = [0, 7, 0], sizes = [2, 1, 256], strides = [1, 1, 1]} : vector<2x8x256xf32> to vector<2x1x256xf32>
    %63 = tpu.concatenate %61, %62 in 1 : vector<2x7x256xf32>, vector<2x1x256xf32> -> vector<2x8x256xf32>
    %cst_23 = arith.constant 2.500000e-01 : f32
    %64 = vector.broadcast %cst_23 : f32 to vector<2x8x256xf32>
    %65 = arith.mulf %64, %63 : vector<2x8x256xf32>
    %66 = arith.addf %60, %65 : vector<2x8x256xf32>
    %67 = arith.addf %58, %66 : vector<2x8x256xf32>
    %68 = vector.extract_strided_slice %30 {offsets = [0, 1, 0], sizes = [2, 7, 256], strides = [1, 1, 1]} : vector<2x8x256xf32> to vector<2x7x256xf32>
    %69 = tpu.concatenate %68, %14 in 1 : vector<2x7x256xf32>, vector<2x1x256xf32> -> vector<2x8x256xf32>
    %70 = arith.addf %67, %69 : vector<2x8x256xf32>
    %c0_24 = arith.constant 0 : index
    %c0_25 = arith.constant 0 : index
    %71 = vector.load %arg4[%c0_24, %c0_25] : memref<1x256xf32, #tpu.memory_space<vmem>>, vector<1x256xf32>
    %c0_26 = arith.constant 0 : index
    %c0_27 = arith.constant 0 : index
    %72 = vector.load %arg5[%c0_26, %c0_27] : memref<1x256xf32, #tpu.memory_space<vmem>>, vector<1x256xf32>
    %73 = vector.shape_cast %50 : vector<2x8x256xf32> to vector<16x256xf32>
    %74 = vector.broadcast %71 : vector<1x256xf32> to vector<16x256xf32>
    %75 = arith.mulf %73, %74 : vector<16x256xf32>
    %76 = vector.broadcast %72 : vector<1x256xf32> to vector<16x256xf32>
    %77 = arith.addf %75, %76 : vector<16x256xf32>
    %cst_28 = arith.constant 0.000000e+00 : f32
    %78 = vector.broadcast %cst_28 : f32 to vector<16x256xf32>
    %79 = arith.maximumf %77, %78 : vector<16x256xf32>
    %c0_29 = arith.constant 0 : index
    %c0_30 = arith.constant 0 : index
    %80 = vector.load %arg6[%c0_29, %c0_30] : memref<16x256xf32, #tpu.memory_space<vmem>>, vector<16x256xf32>
    tpu.vector_store %arg6[%c0_29, %c0_30], %79 {strides = array<i32>} : memref<16x256xf32, #tpu.memory_space<vmem>>, vector<16x256xf32>,
    %81 = vector.shape_cast %70 : vector<2x8x256xf32> to vector<16x256xf32>
    %82 = vector.broadcast %71 : vector<1x256xf32> to vector<16x256xf32>
    %83 = arith.mulf %81, %82 : vector<16x256xf32>
    %84 = vector.broadcast %72 : vector<1x256xf32> to vector<16x256xf32>
    %85 = arith.addf %83, %84 : vector<16x256xf32>
    %cst_31 = arith.constant 0.000000e+00 : f32
    %86 = vector.broadcast %cst_31 : f32 to vector<16x256xf32>
    %87 = arith.maximumf %85, %86 : vector<16x256xf32>
    %c0_32 = arith.constant 0 : index
    %c0_33 = arith.constant 0 : index
    %88 = vector.load %arg7[%c0_32, %c0_33] : memref<16x256xf32, #tpu.memory_space<vmem>>, vector<16x256xf32>
    tpu.vector_store %arg7[%c0_32, %c0_33], %87 {strides = array<i32>} : memref<16x256xf32, #tpu.memory_space<vmem>>, vector<16x256xf32>,
    return
  }
  func.func @transform_0(%arg0: i32, %arg1: i32) -> (i32, i32, i32) {
    %c0_i32 = arith.constant 0 : i32
    %c0_i32_0 = arith.constant 0 : i32
    return %arg0, %arg1, %c0_i32 : i32, i32, i32
  }
  func.func @transform_1(%arg0: i32, %arg1: i32) -> (i32, i32, i32) {
    %c0_i32 = arith.constant 0 : i32
    %c0_i32_0 = arith.constant 0 : i32
    %c0_i32_1 = arith.constant 0 : i32
    return %arg0, %c0_i32, %c0_i32_0 : i32, i32, i32
  }
  func.func @transform_2(%arg0: i32, %arg1: i32) -> (i32, i32) {
    %c0_i32 = arith.constant 0 : i32
    %c0_i32_0 = arith.constant 0 : i32
    %c0_i32_1 = arith.constant 0 : i32
    return %c0_i32, %c0_i32_0 : i32, i32
  }
  func.func @transform_3(%arg0: i32, %arg1: i32) -> (i32, i32) {
    %c0_i32 = arith.constant 0 : i32
    %c0_i32_0 = arith.constant 0 : i32
    %c0_i32_1 = arith.constant 0 : i32
    return %c0_i32, %c0_i32_0 : i32, i32
  }
  func.func @transform_4(%arg0: i32, %arg1: i32) -> (i32, i32) {
    %c0_i32 = arith.constant 0 : i32
    return %arg1, %arg0 : i32, i32
  }
  func.func @transform_5(%arg0: i32, %arg1: i32) -> (i32, i32) {
    %c0_i32 = arith.constant 0 : i32
    return %arg1, %arg0 : i32, i32
  }
}

</mosaic_0001>

<bundles_post_ra>
// kernel: tpu_custom_call.1
= control target key start
LH: loop header
LB: loop body
LE: loop exit
PB: predicated region body
PF: predicated region fallthrough
CT: control target
= control target key end

     0   :  { %s1716_s0 = inlined_call_operand.hbm [shape: bf16[2,16,36], index: 0, kind: input, shape index: {}]   ;;  %s1717_s1 = inlined_call_operand.hbm [shape: bf16[6,36,256], index: 1, kind: input, shape index: {}]   ;;  %s1718_s2 = inlined_call_operand.vmem [shape: f32[1,256], index: 2, kind: input, shape index: {}]   ;;  %s1719_s3 = inlined_call_operand.vmem [shape: f32[1,256], index: 3, kind: input, shape index: {}]   ;;  %s1720_s4 = inlined_call_operand.hbm [shape: f32[16,512], index: 4, kind: output, shape index: {0}]   ;;  %s1721_s5 = inlined_call_operand.hbm [shape: f32[16,512], index: 5, kind: output, shape index: {1}]  }
   0x1   :  { %1723 = sst [smem:[#allocation16_spill]] %s1716_s0 }
   0x2   :  { %11 = vsyncpa [#allocation3], 0 }
   0x3   :  { %13 = vsyncpa [#allocation3 + $0x1], 0 }
   0x4   :  { %14 = vsyncpa [#allocation6], 0 }
   0x5   :  { %16 = vsyncpa [#allocation6 + $0x1], 0 }
   0x6   :  { %17 = vsyncpa [#allocation4], 0 }
   0x7   :  { %19 = vsyncpa [#allocation4 + $0x1], 0 }
   0x8   :  { %20 = vsyncpa [#allocation9], 0 }
   0x9   :  { %22 = vsyncpa [#allocation9 + $0x1], 0  ;;  %s1390_s18 = smov 0   ;;  %s1392_s19 = smov 0  }
   0xa   :  { %s1394_s20 = smov 0   ;;  %s1396_s21 = smov 0  }
   0xb   :  { %s1398_s22 = smov 0   ;;  %s1400_s23 = smov 0  }
   0xc LB: > { %s1009_s24 = sadd.s32 4294967295, %s1346_s23   ;;  %s1010_s25 = sadd.s32 4294967294, %s1346_s23   ;;  %s1346_s23 = sphi %s1400_s23, %s28_s23   ;;  %s1342_s22 = sphi %s1398_s22, %s1739_s22   ;;  %s1338_s21 = sphi %s1396_s21, %s1738_s21   ;;  %s1334_s20 = sphi %s1394_s20, %s1737_s20   ;;  %s1330_s19 = sphi %s1392_s19, %s1736_s19   ;;  %s1326_s18 = sphi %s1390_s18, %s1735_s18  }
   0xd   : > { %s40_s26 = sadd.s32 1, %s1342_s22  ;;  %s49_s27 = sadd.s32 1, %s1334_s20 }
   0xe   : > { %p42_p0 = scmp.ge.s32.totalorder %s40_s26, 2  ;;  %p56_p1 = scmp.ne.s32.totalorder %s1334_s20, %s1330_s19 }
   0xf   : > { %p57_p2 = scmp.eq.s32.totalorder %s1346_s23, 0  ;;  %p62_p3 = scmp.ne.s32.totalorder %s1330_s19, %s1326_s18 }
  0x10   : > { %s1741_s26 = smov (%p42_p0, %s40_s26), 0  ;;  %p63_p5 = scmp.eq.s32.totalorder %s1009_s24, 0 }
  0x11   : > { %1724 = sst [smem:[#allocation14_spill]] %s1741_s26  ;;  %p1431_p4 = por %p57_p2, %p56_p1 }
  0x12   : > { %s44_s29 = ssub.s32 %s1342_s22, %s1741_s26  ;;  %p156_p6 = scmp.eq.s32.totalorder %s1009_s24, 1 }
  0x13   : > { %p47_p7 = scmp.eq.s32.totalorder %s44_s29, 0  ;;  %p1437_p8 = por %p63_p5, %p62_p3 }
  0x14   : > { %p1441_p9 = por %p156_p6, %p56_p1  ;;  %p162_p10 = scmp.eq.s32.totalorder %s1010_s25, 1 }
  0x15   : > { %s1446_s7 = scalar_select %p47_p7, %s1334_s20, %s49_s27  }
  0x16   : > { %p1448_p11 = por %p162_p10, %p62_p3  ;;  %p1012_p12 = scmp.ge.s32.totalorder %s1346_s23, 2 }
  0x17   : > { %1728 = sst [smem:[#allocation15_spill]] %s1446_s7  ;;  %p1092_p13 = scmp.lt.s32.totalorder %s1346_s23, 2 }
  0x18   : > { %s1455_s9 = sand.u32 1, %s1334_s20   ;;  %s1064_s11 = sshll.u32 %s1342_s22, 7 }
  0x19   : > { %s1013_s10 = sshll.u32 %s1455_s9, 3  ;;  %s1730_s0 = sld [smem:[#allocation16_spill]] }
  0x1a   : > { %s220_s15 = scalar_lea.vmem [#allocation2], %s1013_s10  ;;  %p1464_p0 = pnand %p1092_p13, %p1431_p4 }
  0x1b   : > { %s229_s16 = sshll.u32 %s220_s15, 4  ;;  %s217_s24 = scalar_lea.sflag [#allocation3], %s1455_s9  ;;  %s230_s16 = int_to_ptr.vmem [resolvable:$true] %s229_s16 }
  0x1c   : > { %p1178_p1 = pneg %p1464_p0  ;;  %s1189_s25 = scalar_lea.vmem %s230_s16, 128 }
  0x1d   : > { %p1190_p2 = scmp.ne.s32.totalorder %s230_s16, %s1189_s25  ;;  %s1348_s27 = smov [#allocation2]  }
  0x1e   : > { %s1194_s29 = sshll.u32 %s1348_s27, 4  ;;  %s1195_s29 = int_to_ptr.vmem [resolvable:$false] %s1194_s29 }
  0x1f   : > { %s228_s14 = scalar_lea.hbm %s1730_s0, %s1064_s11  ;;  %p1192_p3 = pnand %p1190_p2, %p1178_p1 }
  0x20   : > { %s1196_s10 = scalar_lea.vmem %s1195_s29, 256  ;;  %p1197_p6 = scmp.lt.s32.totalorder %s230_s16, %s1195_s29 }
  0x21   : > { %p1193_p5 = pneg %p1192_p3  ;;  %p1198_p4 = scmp.lt.s32.totalorder %s1196_s10, %s1189_s25 }
  0x23   : > { %p1199_p7 = por %p1198_p4, %p1197_p6 }
  0x25   : > { %p1200_p10 = pnand %p1199_p7, %p1193_p5 }
  0x27   : > { %1203 = shalt.err (!%p1200_p10)
}
  0x28   : > { %s1349_s28 = smov 64   ;;  %s1350_s11 = smov 4  }
  0x29   : > { %1081 = dma.hbm_to_vmem [thread:$0]  (!%p1464_p0), %s228_s14, 128, %s230_s16, %s217_s24, %s1349_s28, %s1349_s28, %s1350_s11  }
  0x2a   : > { %p1017_p13 = scmp.ge.s32.totalorder %s1346_s23, 1  ;;  %p259_p2 = scmp.lt.s32.totalorder %s1346_s23, 3 }
  0x2b   : > { %s1067_s12 = smul.u32 120, %s1455_s9  ;;  %s240_s26 = scalar_lea.sflag [#allocation6], %s1455_s9 }
  0x2c   : > { %p1479_p3 = pnand %p1017_p13, %p259_p2  ;;  %s1093_s15 = smul.u32 1920, %s1342_s22 }
  0x2d   : > { %s243_s10 = scalar_lea.vmem [#allocation5], %s1067_s12  ;;  %s1351_s14 = smov [#allocation5]  }
  0x2e   : > { %s250_s29 = scalar_lea.hbm %s1717_s1, %s1093_s15  ;;  %s251_s0 = sshll.u32 %s243_s10, 4  ;;  %s252_s0 = int_to_ptr.vmem [resolvable:$true] %s251_s0 }
  0x2f   : > { %s1217_s7 = scalar_lea.vmem %s252_s0, 1920  ;;  %s1222_s16 = sshll.u32 %s1351_s14, 4  ;;  %s1223_s16 = int_to_ptr.vmem [resolvable:$false] %s1222_s16 }
  0x30   : > { %p1218_p5 = scmp.ne.s32.totalorder %s252_s0, %s1217_s7  ;;  %s1224_s24 = scalar_lea.vmem %s1223_s16, 3840 }
  0x31   : > { %p1225_p7 = scmp.lt.s32.totalorder %s252_s0, %s1223_s16  ;;  %p1226_p10 = scmp.lt.s32.totalorder %s1224_s24, %s1217_s7 }
  0x32   : > { %p1220_p6 = pnand %p1218_p5, %p1178_p1 }
  0x33   : > { %p1227_p13 = por %p1226_p10, %p1225_p7 }
  0x34   : > { %p1221_p4 = pneg %p1220_p6 }
  0x36   : > { %p1228_p2 = pnand %p1227_p13, %p1221_p4 }
  0x38   : > { %1231 = shalt.err (!%p1228_p2)
}
  0x39   : > { %s1352_s28 = smov 128   ;;  %s1353_s11 = smov 8  }
  0x3a   : > { %1084 = dma.hbm_to_vmem [thread:$0]  (!%p1464_p0), %s250_s29, 1920, %s252_s0, %s240_s26, %s1352_s28, %s1352_s28, %s1353_s11  }
  0x3b   : > { %263 = sbr.rel (%p1479_p3) target bundleno = 359 (0x167), region = 36  ;;  %s1496_s9 = sand.u32 (!%p1479_p3), 1, %s1330_s19  }
  0x3c   : > { %s1018_s12 = sshll.u32 (!%p1479_p3), %s1496_s9, 3  ;;  %s266_s15 = scalar_lea.sflag (!%p1479_p3), [#allocation3], %s1496_s9 }
  0x3d   : > { %s1500_s7 = scalar_lea.vmem (!%p1479_p3), [#allocation2], %s1018_s12 }
  0x40   : > { %1309 = dma.done.wait (%p1437_p8), %s266_s15, 128  }
  0x41   : > { %1311 = vsyncadd (%p1437_p8), %s266_s15, 4294967168  ;;  %s1069_s0 = smul.u32 120, %s1496_s9  ;;  %s275_s26 = scalar_lea.sflag [#allocation6], %s1496_s9 }
  0x43   : > { %s1508_s17 = scalar_lea.vmem [#allocation5], %s1069_s0 }
  0x44   : > { %1313 = dma.done.wait (%p1437_p8), %s275_s26, 1920  }
  0x45   : > { %1315 = vsyncadd (%p1437_p8), %s275_s26, 4294965376  ;;  %v1354_v0 = vmov 0   ;;  %v328_v1 = vld [vmem:[%s1508_s17 + $0x20] sm:$0x33]  ;;  %vm363_vm0 = vcmask 1041408   ;;  %vm359_vm1 = vcmask 293888   ;;  %v770_v26 = vlaneseq }
  0x46   : > { %402 = vmatprep.mubr.bf16.mxu0 %v1354_v0  ;;  %482 = vmatprep.mubr.bf16.mxu1 %v1354_v0  ;;  %v1034_v2 = vld [vmem:[%s1508_s17 + $0x48] sm:$0x33]  ;;  %v1027_v3 = vcombine.high %v328_v1, %v328_v1  ;;  %v1026_v5 = vcombine.low %v328_v1, %v328_v1  ;;  %v1155_v7 = vld [vmem:[%s1508_s17 + $0x14] ss:$8 sps:$4 sm:$0xff]   ;;  %v1159_v11 = vld [vmem:[%s1508_s17 + $0x10] ss:$8 sps:$4 sm:$0xff]  }
  0x47   : > { %v1040_v4 = vcombine.high %v1034_v2, %v1034_v2  ;;  %v1039_v6 = vcombine.low %v1034_v2, %v1034_v2  ;;  %v1157_v8 = vld [vmem:[%s1508_s17 + $0x3c] ss:$8 sps:$4 sm:$0xff]   ;;  %v1160_v12 = vld [vmem:[%s1508_s17 + $0x38] ss:$8 sps:$4 sm:$0xff]   ;;  %v1163_v14 = vld [vmem:[%s1508_s17 + $0x2c] ss:$8 sps:$4 sm:$0xff]  }
  0x48   : > { %1028 = vmatprep.subr.msk.bf16.mxu0 %vm363_vm0, %v1027_v3  ;;  %v365_v9 = vsel %vm363_vm0, %v1026_v5, 0  ;;  %v1161_v13 = vld [vmem:[%s1508_s17 + $0x4] ss:$8 sps:$4 sm:$0xff]   ;;  %v1047_v15 = vld [vmem:[%s1508_s17 + $0x70] sm:$0x33]  ;;  %v771_v27 = vshrl.u32 %v770_v26, 7 }
  0x49   : > { %1041 = vmatprep.subr.msk.bf16.mxu1 %vm363_vm0, %v1040_v4  ;;  %v445_v10 = vsel %vm363_vm0, %v1039_v6, 0  ;;  %381 = vmatpush1.bf16.msra.mxu0 %v365_v9  ;;  %v1165_v16 = vld [vmem:[%s1508_s17] ss:$8 sps:$4 sm:$0xff]   ;;  %v1053_v18 = vcombine.high %v1047_v15, %v1047_v15  ;;  %v1052_v19 = vcombine.low %v1047_v15, %v1047_v15  ;;  %v1172_v22 = vld [vmem:[%s1508_s17 + $0x64] ss:$8 sps:$4 sm:$0xff]   ;;  %vm589_vm2 = vcmask 1046528  }
  0x4a   : > { %461 = vmatpush1.bf16.msra.mxu1 %v445_v10  ;;  %382 = vmatprep.subr.bf16.mxu0 %v1155_v7  ;;  %v1166_v17 = vld [vmem:[%s1508_s17 + $0x28] ss:$8 sps:$4 sm:$0xff]   ;;  %v1175_v24 = vld [vmem:[%s1508_s17 + $0x54] ss:$8 sps:$4 sm:$0xff]   ;;  %v772_v28 = vsub.s32 0, %v771_v27  ;;  %v776_v30 = vsub.s32 1, %v771_v27 }
  0x4b   : > { %462 = vmatprep.subr.bf16.mxu1 %v1157_v8  ;;  %v1167_v20 = vld [vmem:[%s1500_s7] sm:$0xff]   ;;  %v525_v21 = vsel %vm363_vm0, %v1052_v19, 0  ;;  %vm618_vm3 = vcmask 1040384   ;;  %s1019_s29 = sshll.u32 %s1496_s9, 5  ;;  %s1065_s16 = sshll.u32 %s1338_s21, 8 }
  0x4c   : > { %v1170_v23 = vld [vmem:[%s1508_s17 + $0x60] ss:$8 sps:$4 sm:$0xff]   ;;  %v1173_v25 = vld [vmem:[%s1508_s17 + $0x50] ss:$8 sps:$4 sm:$0xff]   ;;  %s1607_s10 = scalar_lea.vmem [#allocation7], %s1019_s29  ;;  %s314_s14 = scalar_lea.vmem [#allocation8], %s1019_s29 }
  0x4d   : > { %383 = vmatpush1.bf16.msra.mxu0 %v1159_v11  ;;  %v767_v29 = vld [vmem:[%s1718_s2] sm:$0x3]  ;;  %s845_s24 = sshll.u32 %s1607_s10, 4  ;;  %s864_s28 = sshll.u32 %s314_s14, 4  ;;  %s1632_s28 = int_to_ptr.vmem [resolvable:$true] %s864_s28  ;;  %s1640_s24 = int_to_ptr.vmem [resolvable:$true] %s845_s24 }
  0x4e   : > { %463 = vmatpush1.bf16.msra.mxu1 %v1160_v12  ;;  %384 = vmatprep.subr.bf16.mxu0 %v1161_v13  ;;  %v768_v31 = vld [vmem:[%s1719_s3] sm:$0x3]  ;;  %v1542_v34 = vrot.slane %v767_v29, %v772_v28  ;;  %v1546_v38 = vrot.slane %v767_v29, %v776_v30  ;;  %s1630_s15 = scalar_lea.hbm %s1721_s5, %s1065_s16  ;;  %s1638_s0 = scalar_lea.hbm %s1720_s4, %s1065_s16 }
  0x4f   : > { %464 = vmatprep.subr.bf16.mxu1 %v1163_v14  ;;  %v1544_v37 = vrot.slane %v768_v31, %v772_v28  ;;  %v1548_v43 = vrot.slane %v768_v31, %v776_v30  ;;  %s829_s26 = scalar_lea.sflag [#allocation9], %s1496_s9  ;;  %s1232_s17 = scalar_lea.vmem %s1632_s28, 512 }
  0x50   : > { %p1233_p8 = scmp.ne.s32.totalorder %s1632_s28, %s1232_s17  ;;  %s1355_s30 = smov [#allocation8]  }
  0x51   : > { %385 = vmatpush1.bf16.msra.mxu0 %v1165_v16  ;;  %s1236_s13 = sshll.u32 %s1355_s30, 4  ;;  %s1237_s13 = int_to_ptr.vmem [resolvable:$false] %s1236_s13 }
  0x52   : > { %465 = vmatpush1.bf16.msra.mxu1 %v1166_v17  ;;  %1054 = vmatprep.subr.msk.bf16.mxu0 %vm363_vm0, %v1053_v18  ;;  %p1234_p0 = pnand %p1233_p8, %p1441_p9  ;;  %s1238_s25 = scalar_lea.vmem %s1237_s13, 1024 }
  0x53   : > { %p1239_p3 = scmp.lt.s32.totalorder %s1632_s28, %s1237_s13  ;;  %p1240_p5 = scmp.lt.s32.totalorder %s1238_s25, %s1232_s17 }
  0x54   : > { %1029 = vmatmul.mubr.msk.bf16.vlgmr.msra.gmra.mxu0 %vm359_vm1, %v1167_v20  ;;  %p1235_p1 = pneg %p1234_p0 }
  0x55   : > { %1042 = vmatmul.mubr.msk.bf16.vlgmr.msra.gmra.mxu1 %vm359_vm1, %v1167_v20  ;;  %541 = vmatpush1.bf16.msra.mxu0 %v525_v21  ;;  %p1241_p6 = por %p1240_p5, %p1239_p3 }
  0x56   : > { %562 = vmatprep.mubr.bf16.mxu0 %v1354_v0  ;;  %542 = vmatprep.subr.bf16.mxu0 %v1172_v22 }
  0x57   : > { %p1242_p4 = pnand %p1241_p6, %p1235_p1 }
  0x59   : > { %543 = vmatpush1.bf16.msra.mxu0 %v1170_v23 }
  0x5a   : > { %544 = vmatprep.subr.bf16.mxu0 %v1175_v24 }
  0x5d   : > { %545 = vmatpush1.bf16.msra.mxu0 %v1173_v25 }
  0x60   : > { %1055 = vmatmul.mubr.msk.bf16.vlgmr.msra.gmra.mxu0 %vm359_vm1, %v1167_v20 }
 0x114   : > { %v404_v32 = vpop.f32.mrf.mxu0 }
 0x115   : > { %v484_v33 = vpop.f32.mrf.mxu1  ;;  %v581_v35 = vrot.slane %v404_v32, 1  ;;  %v703_v36 = vrot.slane %v404_v32, 7  ;;  %v573_v39 = vmul.f32 0.75, %v404_v32 }
 0x116   : > { %v655_v40 = vrot.slane %v484_v33, 7  ;;  %v723_v41 = vrot.slane %v484_v33, 1  ;;  %v406_v42 = vpop.f32.mrf.mxu0  ;;  %v647_v46 = vmul.f32 0.75, %v484_v33 }
 0x117   : > { %v590_v44 = vsel %vm589_vm2, %v581_v35, %v404_v32  ;;  %v711_v45 = vsel %vm618_vm3, %v404_v32, %v703_v36  ;;  %v582_v47 = vrot.slane %v406_v42, 1  ;;  %v704_v55 = vrot.slane %v406_v42, 7  ;;  %v486_v56 = vpop.f32.mrf.mxu1 }
 0x118   : > { %v594_v48 = vmul.f32 0.25, %v590_v44  ;;  %v715_v49 = vmul.f32 0.25, %v711_v45  ;;  %v663_v50 = vsel %vm618_vm3, %v484_v33, %v655_v40  ;;  %v731_v51 = vsel %vm589_vm2, %v723_v41, %v484_v33  ;;  %v408_v61 = vpop.f32.mrf.mxu0 }
 0x119   : > { %v667_v52 = vmul.f32 0.25, %v663_v50  ;;  %v735_v53 = vmul.f32 0.25, %v731_v51  ;;  %v591_v54 = vsel %vm589_vm2, %v582_v47, %v406_v42  ;;  %v574_v59 = vmul.f32 0.75, %v406_v42  ;;  %v488_v14 = vpop.f32.mrf.mxu1 }
 0x11a   : > { %v598_v57 = vadd.f32 %v594_v48, %v573_v39  ;;  %v719_v58 = vadd.f32 %v715_v49, %v573_v39  ;;  %v595_v60 = vmul.f32 0.25, %v591_v54  ;;  %v712_v63 = vsel %vm618_vm3, %v406_v42, %v704_v55  ;;  %v410_v19 = vpop.f32.mrf.mxu0 }
 0x11b   : > { %v739_v62 = vadd.f32 %v735_v53, %v647_v46  ;;  %v648_v0 = vmul.f32 0.75, %v486_v56  ;;  %v656_v1 = vrot.slane %v486_v56, 7  ;;  %v716_v4 = vmul.f32 0.25, %v712_v63  ;;  %v490_v45 = vpop.f32.mrf.mxu1 }
 0x11c   : > { %v635_v2 = vrot.slane %v598_v57, 7  ;;  %v599_v3 = vadd.f32 %v595_v60, %v574_v59  ;;  %v724_v5 = vrot.slane %v486_v56, 1  ;;  %v671_v6 = vadd.f32 %v667_v52, %v647_v46 }
 0x11d   : > { %v1556_v7 = vadd.f32 %v739_v62, %v719_v58  ;;  %v664_v8 = vsel %vm618_vm3, %v486_v56, %v656_v1  ;;  %v583_v9 = vrot.slane %v408_v61, 1  ;;  %v575_v13 = vmul.f32 0.75, %v408_v61 }
 0x11e   : > { %v643_v10 = vsel %vm618_vm3, 0.0, %v635_v2  ;;  %v636_v11 = vrot.slane %v599_v3, 7  ;;  %v668_v12 = vmul.f32 0.25, %v664_v8  ;;  %v720_v15 = vadd.f32 %v716_v4, %v574_v59 }
 0x11f   : > { %v732_v16 = vsel %vm589_vm2, %v724_v5, %v486_v56  ;;  %v592_v17 = vsel %vm589_vm2, %v583_v9, %v408_v61  ;;  %v705_v18 = vrot.slane %v408_v61, 7  ;;  %v1563_v24 = vadd.f32 %v671_v6, %v643_v10 }
 0x120   : > { %v644_v20 = vsel %vm618_vm3, 0.0, %v636_v11  ;;  %v672_v21 = vadd.f32 %v668_v12, %v648_v0  ;;  %v736_v22 = vmul.f32 0.25, %v732_v16  ;;  %v596_v23 = vmul.f32 0.25, %v592_v17  ;;  %v564_v28 = vpop.f32.mrf.mxu0 }
 0x121   : > { %v713_v25 = vsel %vm618_vm3, %v408_v61, %v705_v18  ;;  %v657_v26 = vrot.slane %v488_v14, 7  ;;  %v725_v27 = vrot.slane %v488_v14, 1  ;;  %v649_v32 = vmul.f32 0.75, %v488_v14 }
 0x122   : > { %v740_v29 = vadd.f32 %v736_v22, %v648_v0  ;;  %v600_v30 = vadd.f32 %v596_v23, %v575_v13  ;;  %v717_v31 = vmul.f32 0.25, %v713_v25  ;;  %v1566_v33 = vadd.f32 %v672_v21, %v644_v20  ;;  %v566_v50 = vpop.f32.mrf.mxu0 }
 0x123   : > { %v665_v35 = vsel %vm618_vm3, %v488_v14, %v657_v26  ;;  %v733_v36 = vsel %vm589_vm2, %v725_v27, %v488_v14  ;;  %v584_v39 = vrot.slane %v410_v19, 1  ;;  %v576_v44 = vmul.f32 0.75, %v410_v19 }
 0x124   : > { %v1570_v40 = vadd.f32 %v740_v29, %v720_v15  ;;  %v637_v41 = vrot.slane %v600_v30, 7  ;;  %v669_v42 = vmul.f32 0.25, %v665_v35  ;;  %v721_v46 = vadd.f32 %v717_v31, %v575_v13  ;;  %v568_v3 = vpop.f32.mrf.mxu0 }
 0x125   : > { %v737_v47 = vmul.f32 0.25, %v733_v36  ;;  %v593_v48 = vsel %vm589_vm2, %v584_v39, %v410_v19  ;;  %v706_v49 = vrot.slane %v410_v19, 7  ;;  %v658_v54 = vrot.slane %v490_v45, 7 }
 0x126   : > { %v645_v51 = vsel %vm618_vm3, 0.0, %v637_v41  ;;  %v673_v52 = vadd.f32 %v669_v42, %v649_v32  ;;  %v597_v53 = vmul.f32 0.25, %v593_v48  ;;  %v650_v57 = vmul.f32 0.75, %v490_v45  ;;  %v570_v21 = vpop.f32.mrf.mxu0 }
 0x127   : > { %v741_v55 = vadd.f32 %v737_v47, %v649_v32  ;;  %v714_v56 = vsel %vm618_vm3, %v410_v19, %v706_v49  ;;  %v726_v58 = vrot.slane %v490_v45, 1  ;;  %v666_v61 = vsel %vm618_vm3, %v490_v45, %v658_v54 }
 0x128   : > { %v601_v59 = vadd.f32 %v597_v53, %v576_v44  ;;  %v718_v60 = vmul.f32 0.25, %v714_v56  ;;  %v602_v62 = vmul.f32 0.75, %v564_v28  ;;  %v677_v63 = vadd.f32 %v673_v52, %v645_v51 }
 0x129   : > { %v670_v0 = vmul.f32 0.25, %v666_v61  ;;  %v734_v1 = vsel %vm589_vm2, %v726_v58, %v490_v45  ;;  %v610_v2 = vrot.slane %v564_v28, 7  ;;  %v679_v8 = vrot.slane %v564_v28, 1 }
 0x12a   : > { %v638_v4 = vrot.slane %v601_v59, 7  ;;  %v722_v5 = vadd.f32 %v718_v60, %v576_v44  ;;  %v738_v6 = vmul.f32 0.25, %v734_v1  ;;  %v745_v9 = vadd.f32 %v741_v55, %v721_v46 }
 0x12b   : > { %v1577_v10 = vadd.f32 %v670_v0, %v650_v57  ;;  %v619_v11 = vsel %vm618_vm3, %v564_v28, %v610_v2  ;;  %v611_v12 = vrot.slane %v566_v50, 7  ;;  %v687_v15 = vsel %vm589_vm2, %v679_v8, %v564_v28 }
 0x12c   : > { %v742_v13 = vadd.f32 %v738_v6, %v650_v57  ;;  %v623_v14 = vmul.f32 0.25, %v619_v11  ;;  %v603_v16 = vmul.f32 0.75, %v566_v50  ;;  %v1582_v17 = vsel %vm618_vm3, 0.0, %v638_v4 }
 0x12d   : > { %v691_v18 = vmul.f32 0.25, %v687_v15  ;;  %v620_v19 = vsel %vm618_vm3, %v566_v50, %v611_v12  ;;  %v680_v20 = vrot.slane %v566_v50, 1  ;;  %v604_v26 = vmul.f32 0.75, %v568_v3 }
 0x12e   : > { %v746_v22 = vadd.f32 %v742_v13, %v722_v5  ;;  %v627_v23 = vadd.f32 %v623_v14, %v602_v62  ;;  %v624_v25 = vmul.f32 0.25, %v620_v19  ;;  %v612_v30 = vrot.slane %v568_v3, 7 }
 0x12f   : > { %v695_v27 = vadd.f32 %v691_v18, %v602_v62  ;;  %v688_v29 = vsel %vm589_vm2, %v680_v20, %v566_v50  ;;  %v681_v31 = vrot.slane %v568_v3, 1  ;;  %v605_v36 = vmul.f32 0.75, %v570_v21 }
 0x130   : > { %v751_v28 = vrot.slane %v627_v23, 1  ;;  %v628_v32 = vadd.f32 %v624_v25, %v603_v16  ;;  %v692_v35 = vmul.f32 0.25, %v688_v29  ;;  %v621_v41 = vsel %vm618_vm3, %v568_v3, %v612_v30 }
 0x131   : > { %v699_v39 = vadd.f32 %v695_v27, %v1563_v24  ;;  %v689_v42 = vsel %vm589_vm2, %v681_v31, %v568_v3  ;;  %v613_v44 = vrot.slane %v570_v21, 7  ;;  %v625_v48 = vmul.f32 0.25, %v621_v41 }
 0x132   : > { %v759_v45 = vsel %vm589_vm2, %v751_v28, 0.0  ;;  %v696_v46 = vadd.f32 %v692_v35, %v603_v16  ;;  %v752_v47 = vrot.slane %v628_v32, 1  ;;  %v693_v51 = vmul.f32 0.25, %v689_v42 }
 0x133   : > { %v763_v49 = vadd.f32 %v759_v45, %v1556_v7  ;;  %v780_v50 = vmul.f32 %v1542_v34, %v699_v39  ;;  %v622_v52 = vsel %vm618_vm3, %v570_v21, %v613_v44  ;;  %v629_v54 = vadd.f32 %v625_v48, %v604_v26 }
 0x134   : > { %v700_v24 = vadd.f32 %v696_v46, %v1566_v33  ;;  %v760_v53 = vsel %vm589_vm2, %v752_v47, 0.0  ;;  %v626_v55 = vmul.f32 0.25, %v622_v52  ;;  %v697_v59 = vadd.f32 %v693_v51, %v604_v26 }
 0x135   : > { %v795_v56 = vadd.f32 %v1544_v37, %v780_v50  ;;  %v807_v57 = vmul.f32 %v1542_v34, %v763_v49  ;;  %v764_v58 = vadd.f32 %v760_v53, %v1570_v40  ;;  %v753_v60 = vrot.slane %v629_v54, 1 }
 0x136   : > { %v781_v7 = vmul.f32 %v1546_v38, %v700_v24  ;;  %v630_v61 = vadd.f32 %v626_v55, %v605_v36  ;;  %v682_v62 = vrot.slane %v570_v21, 1  ;;  %v701_v2 = vadd.f32 %v697_v59, %v677_v63 }
 0x137   : > { %v799_v0 = vmax.f32 %v795_v56, 0.0  ;;  %v811_v33 = vadd.f32 %v807_v57, %v1544_v37  ;;  %v808_v1 = vmul.f32 %v1546_v38, %v764_v58  ;;  %v761_v4 = vsel %vm589_vm2, %v753_v60, 0.0 }
 0x138   : > { %v796_v3 = vadd.f32 %v1548_v43, %v781_v7  ;;  %v690_v5 = vsel %vm589_vm2, %v682_v62, %v570_v21  ;;  %v754_v40 = vrot.slane %v630_v61, 1  ;;  %v765_v11 = vadd.f32 %v761_v4, %v745_v9 }
 0x139   : > { %803 = vst [vmem:[%s1607_s10] sm:$0xff] %v799_v0  ;;  %v815_v6 = vmax.f32 %v811_v33, 0.0  ;;  %v812_v8 = vadd.f32 %v808_v1, %v1548_v43  ;;  %v782_v12 = vmul.f32 %v1542_v34, %v701_v2  ;;  %v694_v13 = vmul.f32 0.25, %v690_v5 }
 0x13a   : > { %v800_v63 = vmax.f32 %v796_v3, 0.0  ;;  %v762_v14 = vsel %vm589_vm2, %v754_v40, 0.0  ;;  %v809_v18 = vmul.f32 %v1542_v34, %v765_v11  ;;  %v678_v9 = vadd.f32 %v1577_v10, %v1582_v17 }
 0x13b   : > { %819 = vst [vmem:[%s314_s14] sm:$0xff] %v815_v6  ;;  %v816_v15 = vmax.f32 %v812_v8, 0.0  ;;  %v797_v16 = vadd.f32 %v1544_v37, %v782_v12  ;;  %v766_v19 = vadd.f32 %v762_v14, %v746_v22  ;;  %v698_v20 = vadd.f32 %v694_v13, %v605_v36 }
 0x13c   : > { %804 = vst [vmem:[%s1607_s10 + $0x8] sm:$0xff] %v800_v63  ;;  %v813_v23 = vadd.f32 %v809_v18, %v1544_v37 }
 0x13d   : > { %820 = vst [vmem:[%s314_s14 + $0x8] sm:$0xff] %v816_v15  ;;  %v801_v21 = vmax.f32 %v797_v16, 0.0  ;;  %v810_v25 = vmul.f32 %v1546_v38, %v766_v19  ;;  %v702_v26 = vadd.f32 %v698_v20, %v678_v9 }
 0x13e   : > { %v817_v34 = vmax.f32 %v813_v23, 0.0 }
 0x13f   : > { %805 = vst [vmem:[%s1607_s10 + $0x10] sm:$0xff] %v801_v21  ;;  %v814_v22 = vadd.f32 %v810_v25, %v1548_v43  ;;  %v783_v10 = vmul.f32 %v1546_v38, %v702_v26 }
 0x140   : > { %821 = vst [vmem:[%s314_s14 + $0x10] sm:$0xff] %v817_v34 }
 0x141   : > { %v818_v17 = vmax.f32 %v814_v22, 0.0  ;;  %v798_v37 = vadd.f32 %v1548_v43, %v783_v10 }
 0x143   : > { %822 = vst [vmem:[%s314_s14 + $0x18] sm:$0xff] %v818_v17  ;;  %v802_v38 = vmax.f32 %v798_v37, 0.0 }
 0x144   : > { %1245 = shalt.err (!%p1242_p4)
}
 0x145   : > { %s1246_s27 = scalar_lea.hbm %s1630_s15, 512  ;;  %s1250_s16 = scalar_lea.hbm %s1721_s5, 1024 }
 0x146   : > { %p1247_p7 = scmp.ne.s32.totalorder %s1630_s15, %s1246_s27  ;;  %p1251_p2 = scmp.lt.s32.totalorder %s1630_s15, %s1721_s5 }
 0x147   : > { %p1252_p8 = scmp.lt.s32.totalorder %s1250_s16, %s1246_s27 }
 0x148   : > { %p1248_p10 = pnand %p1247_p7, %p1441_p9 }
 0x149   : > { %p1253_p0 = por %p1252_p8, %p1251_p2 }
 0x14a   : > { %p1249_p13 = pneg %p1248_p10 }
 0x14c   : > { %p1254_p1 = pnand %p1253_p0, %p1249_p13 }
 0x14e   : > { %1257 = shalt.err (!%p1254_p1)
}
 0x14f   : > { %s1356_s21 = smov 256   ;;  %s1357_s7 = smov 512   ;;  %806 = vst [vmem:[%s1607_s10 + $0x18] sm:$0xff] %v802_v38 }
 0x150   : > { %s1358_s17 = smov 16   ;;  %s824_s30 = scalar_lea.sflag [#allocation4], %s1496_s9 }
 0x151   : > { %1075 = dma.vmem_to_hbm [thread:$0]  (%p1441_p9), %s1632_s28, 512, %s1630_s15, %s829_s26, %s1356_s21, %s1357_s7, %s1358_s17  }
 0x152   : > { %s1258_s13 = scalar_lea.vmem %s1640_s24, 512  ;;  %s1359_s25 = smov [#allocation7]  }
 0x153   : > { %p1259_p3 = scmp.ne.s32.totalorder %s1640_s24, %s1258_s13  ;;  %s1262_s27 = sshll.u32 %s1359_s25, 4  ;;  %s1263_s27 = int_to_ptr.vmem [resolvable:$false] %s1262_s27 }
 0x154   : > { %s1264_s29 = scalar_lea.vmem %s1263_s27, 1024  ;;  %p1265_p4 = scmp.lt.s32.totalorder %s1640_s24, %s1263_s27 }
 0x155   : > { %p1260_p5 = pnand %p1259_p3, %p1441_p9  ;;  %p1266_p7 = scmp.lt.s32.totalorder %s1264_s29, %s1258_s13 }
 0x157   : > { %p1261_p6 = pneg %p1260_p5  ;;  %p1267_p10 = por %p1266_p7, %p1265_p4 }
 0x159   : > { %p1268_p13 = pnand %p1267_p10, %p1261_p6 }
 0x15b   : > { %1271 = shalt.err (!%p1268_p13)
}
 0x15c   : > { %s1272_s10 = scalar_lea.hbm %s1638_s0, 512  ;;  %s1276_s15 = scalar_lea.hbm %s1720_s4, 1024 }
 0x15d   : > { %p1273_p2 = scmp.ne.s32.totalorder %s1638_s0, %s1272_s10  ;;  %p1277_p1 = scmp.lt.s32.totalorder %s1638_s0, %s1720_s4 }
 0x15e   : > { %p1278_p3 = scmp.lt.s32.totalorder %s1276_s15, %s1272_s10 }
 0x15f   : > { %p1274_p8 = pnand %p1273_p2, %p1441_p9 }
 0x160   : > { %p1279_p5 = por %p1278_p3, %p1277_p1 }
 0x161   : > { %p1275_p0 = pneg %p1274_p8 }
 0x163   : > { %p1280_p6 = pnand %p1279_p5, %p1275_p0 }
 0x165   : > { %1283 = shalt.err (!%p1280_p6)
}
 0x166   : > { %1074 = dma.vmem_to_hbm [thread:$0]  (%p1441_p9), %s1640_s24, 512, %s1638_s0, %s824_s30, %s1356_s21, %s1357_s7, %s1358_s17  }
 0x167 PF: > { %s879_s16 = sand.u32 1, %s1326_s18   ;;  %p1086_p4 = pnand %p1012_p12, %p1448_p11 }
 0x168   : > { %s880_s11 = scalar_lea.sflag [#allocation4], %s879_s16 }
 0x169   : > { %p1087_p7 = pneg %p1086_p4 }
 0x16b   : > { %1317 = dma.done.wait (%p1087_p7), %s880_s11, 512  }
 0x16c   : > { %1319 = vsyncadd (%p1087_p7), %s880_s11, 4294966784  ;;  %s889_s12 = scalar_lea.sflag [#allocation9], %s879_s16 }
 0x16d   : > { %1321 = dma.done.wait (%p1087_p7), %s889_s12, 512  }
 0x16e   : > { %1323 = vsyncadd (%p1087_p7), %s889_s12, 4294966784  ;;  %s28_s23 = sadd.s32 1, %s1346_s23   ;;  %s1733_s6 = sld [smem:[#allocation15_spill]] }
 0x16f   : > { %p25_p10 = scmp.ge.s32.totalorder %s28_s23, 4   ;;  %s1734_s24 = sld [smem:[#allocation14_spill]] }
 0x170   : > { %s1735_s18 = smov %s1330_s19  ;;  %s1736_s19 = smov %s1334_s20 }
 0x171   : > { %s1738_s21 = smov %s1342_s22  ;;  %27 = sbr.rel (!%p25_p10) target bundleno = 12 (0xc), region = 113 }
 0x174   : > { %s1737_s20 = smov %s1733_s6 }
 0x175   : > { %s1739_s22 = smov %s1734_s24 }
 0x176   :  { %894 = vsyncpa [#allocation3], 1 }
 0x177   :  { %896 = vsyncpa [#allocation3 + $0x1], 1 }
 0x178   :  { %897 = vsyncpa [#allocation6], 1 }
 0x179   :  { %899 = vsyncpa [#allocation6 + $0x1], 1 }
 0x17a   :  { %900 = vsyncpa [#allocation4], 1 }
 0x17b   :  { %902 = vsyncpa [#allocation4 + $0x1], 1 }
 0x17c   :  { %903 = vsyncpa [#allocation9], 1 }
 0x17d   :  { %905 = vsyncpa [#allocation9 + $0x1], 1 }

</bundles_post_ra>
